<compile_context>
chip_gen: v7x
topology: tpu7x:2x2x1
jax: 0.10.0
libtpu: 0.0.40
codegen_flags: <defaults>
</compile_context>

<pallas_src>
import jax
import jax.numpy as jnp
from jax.experimental import pallas as pl
from jax.experimental.pallas import tpu as pltpu

IN_FEATURES = 100
OUT_FEATURES = 10
_SQRT_2_OVER_PI = 0.7978845608028654
_GELU_C = 0.044715


def _linear_gelu_kernel(x_ref, w_ref, b_ref, o_ref):
    # x: [TM, K], w: [K, N] (pre-transposed), b: [1, N]  ->  o: [TM, N]
    x = x_ref[...]
    w = w_ref[...]
    b = b_ref[...]

    # MXU matmul in its native [M,K] x [K,N] form, f32 accumulation.
    z = jnp.dot(x, w, preferred_element_type=jnp.float32) + b      # [TM, N]

    # GELU-tanh chain (EUP handles tanh; one fewer VALU mul than naive form).
    z2 = z * z
    inner = (z * (1.0 + _GELU_C * z2)) * _SQRT_2_OVER_PI
    o_ref[...] = (0.5 * (jnp.tanh(inner) + 1.0)) * z


def model_forward(x, weight, bias, *, tm=4096):
    """x: [M, 100] f32, weight: [10, 100] f32 (PyTorch layout), bias: [10] f32."""
    M = x.shape[0]

    # Row tile: multiple of 8; <= tm (VMEM-friendly on v5e with the raised
    # scoped limit); <= round_up(cdiv(M,2), 8) so the grid has >= 2 steps
    # whenever M > 8 (v7x megacore sharding via "parallel").
    half = -(-M // 2)                                   # cdiv(M, 2)
    TM = max(8, min(tm, ((half + 7) // 8) * 8))
    grid = (pl.cdiv(M, TM),)                            # ragged last block OK

    w_t = weight.T                                       # one-time [K, N] layout
    b2 = bias.reshape(1, OUT_FEATURES)

    cost = pl.CostEstimate(
        flops=2 * M * IN_FEATURES * OUT_FEATURES,
        transcendentals=M * OUT_FEATURES,
        bytes_accessed=4 * (M * (IN_FEATURES + OUT_FEATURES)
                            + IN_FEATURES * OUT_FEATURES + OUT_FEATURES),
    )

    return pl.pallas_call(
        _linear_gelu_kernel,
        out_shape=jax.ShapeDtypeStruct((M, OUT_FEATURES), jnp.float32),
        grid_spec=pltpu.PrefetchScalarGridSpec(
            num_scalar_prefetch=0,
            grid=grid,
            in_specs=[
                # x: tiled over rows, double-buffered DMA pipelined vs compute.
                pl.BlockSpec((TM, IN_FEATURES), lambda i: (i, 0)),
                # weight / bias: constant block across the grid, stays in VMEM.
                pl.BlockSpec((IN_FEATURES, OUT_FEATURES), lambda i: (0, 0)),
                pl.BlockSpec((1, OUT_FEATURES), lambda i: (0, 0)),
            ],
            out_specs=pl.BlockSpec((TM, OUT_FEATURES), lambda i: (i, 0)),
        ),
        compiler_params=pltpu.CompilerParams(
            # M axis is embarrassingly parallel -> use both TCs on v7x.
            dimension_semantics=("parallel",),
            # Headroom for TM=4096 double-buffered blocks on v5e (16 MiB default).
            vmem_limit_bytes=64 << 20,
        ),
        cost_estimate=cost,
    )(x, w_t, b2)


def reference_forward(x, weight, bias):
    z = x @ weight.T + bias
    t1 = z * 0.5
    t2 = z + z * z * z * _GELU_C
    t3 = t2 * _SQRT_2_OVER_PI
    t4 = jnp.tanh(t3)
    return t1 * (t4 + 1.0)


if __name__ == "__main__":
    key = jax.random.PRNGKey(0)
    kw, kb, kx1, kx2 = jax.random.split(key, 4)

    # Deterministic parameter init (mimics nn.Linear uniform(-1/sqrt(in), 1/sqrt(in)))
    bound = 1.0 / jnp.sqrt(jnp.float32(IN_FEATURES))
    weight = jax.random.uniform(
        kw, (OUT_FEATURES, IN_FEATURES), dtype=jnp.float32, minval=-bound, maxval=bound
    )
    bias = jax.random.uniform(
        kb, (OUT_FEATURES,), dtype=jnp.float32, minval=-bound, maxval=bound
    )

    # Two batch sizes: M=8 (exact single tile) and M=100 (exercises the ragged
    # final block + 2-step grid).
    for M, kx in ((8, kx1), (100, kx2)):
        x = jax.random.normal(kx, (M, IN_FEATURES), dtype=jnp.float32)

        out = model_forward(x, weight, bias)
        out = jax.block_until_ready(out)

        ref = reference_forward(x, weight, bias)
        assert out.shape == (M, OUT_FEATURES), f"bad shape {out.shape}"
        assert jnp.allclose(out, ref, atol=1e-5, rtol=1e-5), f"mismatch vs reference (M={M})"

    print("KERNEL_OK")
</pallas_src>

<mosaic_0001>
module attributes {stable_mosaic.version = 11 : i64} {
  func.func @_linear_gelu_kernel(%arg0: i32, %arg1: memref<8x100xf32, #tpu.memory_space<vmem>>, %arg2: memref<100x10xf32, #tpu.memory_space<vmem>>, %arg3: memref<1x10xf32, #tpu.memory_space<vmem>>, %arg4: memref<8x10xf32, #tpu.memory_space<vmem>>) attributes {dimension_semantics = [#tpu.dimension_semantics<parallel>], iteration_bounds = array<i64: 1>, scalar_prefetch = 0 : i64, scratch_operands = 0 : i64, tpu.core_type = #tpu.core_type<tc>, window_params = [{transform_indices = @transform_0, window_bounds = array<i64: 8, 100>}, {pipeline_mode = #tpu.pipeline_mode<synchronous>, transform_indices = @transform_1, window_bounds = array<i64: 100, 10>}, {pipeline_mode = #tpu.pipeline_mode<synchronous>, transform_indices = @transform_2, window_bounds = array<i64: 1, 10>}, {transform_indices = @transform_3, window_bounds = array<i64: 8, 10>}]} {
    %c0 = arith.constant 0 : index
    %c0_0 = arith.constant 0 : index
    %0 = vector.load %arg1[%c0, %c0_0] : memref<8x100xf32, #tpu.memory_space<vmem>>, vector<8x100xf32>
    %c0_1 = arith.constant 0 : index
    %c0_2 = arith.constant 0 : index
    %1 = vector.load %arg2[%c0_1, %c0_2] : memref<100x10xf32, #tpu.memory_space<vmem>>, vector<100x10xf32>
    %c0_3 = arith.constant 0 : index
    %c0_4 = arith.constant 0 : index
    %2 = vector.load %arg3[%c0_3, %c0_4] : memref<1x10xf32, #tpu.memory_space<vmem>>, vector<1x10xf32>
    %cst = arith.constant dense<0.000000e+00> : vector<8x10xf32>
    %3 = tpu.matmul %0, %1, %cst {dimension_numbers = #tpu.dot_dimension_numbers<[1], [0], [0], [1], [0, 0, 1, 1], [], []>} : vector<8x100xf32>, vector<100x10xf32>, vector<8x10xf32> -> vector<8x10xf32>
    %4 = vector.broadcast %2 : vector<1x10xf32> to vector<8x10xf32>
    %5 = arith.addf %3, %4 : vector<8x10xf32>
    %6 = arith.mulf %5, %5 : vector<8x10xf32>
    %cst_5 = arith.constant 4.471500e-02 : f32
    %7 = vector.broadcast %cst_5 : f32 to vector<8x10xf32>
    %8 = arith.mulf %7, %6 : vector<8x10xf32>
    %cst_6 = arith.constant 1.000000e+00 : f32
    %9 = vector.broadcast %cst_6 : f32 to vector<8x10xf32>
    %10 = arith.addf %9, %8 : vector<8x10xf32>
    %11 = arith.mulf %5, %10 : vector<8x10xf32>
    %cst_7 = arith.constant 0.797884583 : f32
    %12 = vector.broadcast %cst_7 : f32 to vector<8x10xf32>
    %13 = arith.mulf %11, %12 : vector<8x10xf32>
    %14 = math.tanh %13 : vector<8x10xf32>
    %cst_8 = arith.constant 1.000000e+00 : f32
    %15 = vector.broadcast %cst_8 : f32 to vector<8x10xf32>
    %16 = arith.addf %14, %15 : vector<8x10xf32>
    %cst_9 = arith.constant 5.000000e-01 : f32
    %17 = vector.broadcast %cst_9 : f32 to vector<8x10xf32>
    %18 = arith.mulf %17, %16 : vector<8x10xf32>
    %19 = arith.mulf %18, %5 : vector<8x10xf32>
    %c0_10 = arith.constant 0 : index
    %c0_11 = arith.constant 0 : index
    %20 = vector.load %arg4[%c0_10, %c0_11] : memref<8x10xf32, #tpu.memory_space<vmem>>, vector<8x10xf32>
    tpu.vector_store %arg4[%c0_10, %c0_11], %19 {strides = array<i32>} : memref<8x10xf32, #tpu.memory_space<vmem>>, vector<8x10xf32>,
    return
  }
  func.func @transform_0(%arg0: i32) -> (i32, i32) {
    %c0_i32 = arith.constant 0 : i32
    %c0_i32_0 = arith.constant 0 : i32
    return %arg0, %c0_i32 : i32, i32
  }
  func.func @transform_1(%arg0: i32) -> (i32, i32) {
    %c0_i32 = arith.constant 0 : i32
    %c0_i32_0 = arith.constant 0 : i32
    %c0_i32_1 = arith.constant 0 : i32
    return %c0_i32, %c0_i32_0 : i32, i32
  }
  func.func @transform_2(%arg0: i32) -> (i32, i32) {
    %c0_i32 = arith.constant 0 : i32
    %c0_i32_0 = arith.constant 0 : i32
    %c0_i32_1 = arith.constant 0 : i32
    return %c0_i32, %c0_i32_0 : i32, i32
  }
  func.func @transform_3(%arg0: i32) -> (i32, i32) {
    %c0_i32 = arith.constant 0 : i32
    %c0_i32_0 = arith.constant 0 : i32
    return %arg0, %c0_i32 : i32, i32
  }
}

</mosaic_0001>

<bundles_post_ra>
// kernel: tpu_custom_call.1
= control target key start
LH: loop header
LB: loop body
LE: loop exit
PB: predicated region body
PF: predicated region fallthrough
CT: control target
= control target key end

     0   :  { %8 = vsyncpa [#allocation3], 0  ;;  %s424_s0 = inlined_call_operand.hbm [shape: f32[8,100], index: 0, kind: input, shape index: {}]   ;;  %s425_s1 = inlined_call_operand.hbm [shape: f32[100,10], index: 1, kind: input, shape index: {}]   ;;  %s426_s2 = inlined_call_operand.hbm [shape: f32[1,10], index: 2, kind: input, shape index: {}]   ;;  %s427_s3 = inlined_call_operand.hbm [shape: f32[8,10], index: 3, kind: output, shape index: {}]  }
   0x1   :  { %9 = vsyncpa [#allocation6], 0 }
   0x2   :  { %10 = vsyncpa [#allocation4], 0  ;;  %s347_s12 = smov [#allocation5]   ;;  %s253_s16 = scalar_lea.hbm %s425_s1, 1664 }
   0x3   :  { %s26_s13 = sshll.u32 %s347_s12, 4  ;;  %p254_p0 = scmp.ne.s32.totalorder %s425_s1, %s253_s16  ;;  %s27_s13 = int_to_ptr.vmem [resolvable:$true] %s26_s13 }
   0x4   :  { %p257_p1 = scmp.lt.u32.totalorder %s253_s16, %s425_s1 }
   0x6   :  { %p259_p2 = pnand %p257_p1, %p254_p0 }
   0x8   :  { %262 = shalt.err (!%p259_p2)
}
   0x9   :  { %s263_s21 = scalar_lea.vmem %s27_s13, 1664  ;;  %p268_p4 = scmp.lt.s32.totalorder %s27_s13, %s27_s13 }
   0xa   :  { %p264_p3 = scmp.ne.s32.totalorder %s27_s13, %s263_s21  ;;  %p269_p5 = scmp.lt.s32.totalorder %s263_s21, %s263_s21 }
   0xc   :  { %p270_p6 = por %p269_p5, %p268_p4 }
   0xe   :  { %p271_p7 = pnand %p270_p6, %p264_p3 }
  0x10   :  { %274 = shalt.err (!%p271_p7)
}
  0x11   :  { %s348_s22 = smov 128   ;;  %s349_s23 = smov 8  }
  0x12   :  { %32 = dma.hbm_to_vmem [thread:$0]  %s425_s1, 1664, %s27_s13, [#allocation6], %s348_s22, %s348_s22, %s349_s23  }
  0x13   :  { %s350_s26 = smov [#allocation2]   ;;  %s351_s28 = smov [#allocation7]  }
  0x14   :  { %s17_s27 = sshll.u32 %s350_s26, 4  ;;  %s39_s29 = sshll.u32 %s351_s28, 4  ;;  %s18_s27 = int_to_ptr.vmem [resolvable:$true] %s17_s27  ;;  %s40_s29 = int_to_ptr.vmem [resolvable:$true] %s39_s29 }
  0x15   :  { %s275_s5 = scalar_lea.hbm %s424_s0, 128 }
  0x16   :  { %p276_p8 = scmp.ne.s32.totalorder %s424_s0, %s275_s5  ;;  %p279_p9 = scmp.lt.u32.totalorder %s275_s5, %s424_s0 }
  0x18   :  { %p281_p10 = pnand %p279_p9, %p276_p8 }
  0x1a   :  { %284 = shalt.err (!%p281_p10)
}
  0x1b   :  { %s285_s1 = scalar_lea.vmem %s18_s27, 128  ;;  %p290_p12 = scmp.lt.s32.totalorder %s18_s27, %s18_s27 }
  0x1c   :  { %p286_p11 = scmp.ne.s32.totalorder %s18_s27, %s285_s1  ;;  %p291_p13 = scmp.lt.s32.totalorder %s285_s1, %s285_s1 }
  0x1e   :  { %p292_p0 = por %p291_p13, %p290_p12 }
  0x20   :  { %p293_p1 = pnand %p292_p0, %p286_p11 }
  0x22   :  { %296 = shalt.err (!%p293_p1)
}
  0x23   :  { %20 = dma.hbm_to_vmem [thread:$0]  %s424_s0, 128, %s18_s27, [#allocation3]  }
  0x24   :  { %s297_s14 = scalar_lea.hbm %s426_s2, 16 }
  0x25   :  { %p298_p2 = scmp.ne.s32.totalorder %s426_s2, %s297_s14  ;;  %p301_p3 = scmp.lt.u32.totalorder %s297_s14, %s426_s2 }
  0x27   :  { %p303_p4 = pnand %p301_p3, %p298_p2 }
  0x29   :  { %306 = shalt.err (!%p303_p4)
}
  0x2a   :  { %s307_s19 = scalar_lea.vmem %s40_s29, 16  ;;  %s311_s20 = scalar_lea.vmem %s40_s29, 32 }
  0x2b   :  { %p308_p5 = scmp.ne.s32.totalorder %s40_s29, %s307_s19  ;;  %p312_p6 = scmp.lt.s32.totalorder %s40_s29, %s40_s29 }
  0x2c   :  { %p313_p7 = scmp.lt.s32.totalorder %s311_s20, %s307_s19 }
  0x2e   :  { %p314_p8 = por %p313_p7, %p312_p6 }
  0x30   :  { %p315_p9 = pnand %p314_p8, %p308_p5 }
  0x32   :  { %318 = shalt.err (!%p315_p9)
}
  0x33   :  { %42 = dma.hbm_to_vmem [thread:$0]  %s426_s2, 16, %s40_s29, [#allocation6]  }
  0x34   :  { %341 = dma.done.wait [#allocation3], 128  }
  0x35   :  { %342 = vsyncadd [#allocation3], 4294967168 }
  0x36   :  { %343 = dma.done.wait [#allocation6], 1680  }
  0x37   :  { %344 = vsyncadd [#allocation6], 4294965616  ;;  %v352_v0 = vmov 0.0|0.0   ;;  %vm353_vm0 = vmmov 0   ;;  %v354_v1 = vmov 0.0   ;;  %v53_v2 = vld [vmem:[#allocation5] sm:$0xff] }
  0x38   :  { %224 = vmatprep.subr.bf16.mxu0 %v352_v0  ;;  %221 = vmatprep.mubr.msk.f32.mxu0 %vm353_vm0, %v354_v1  ;;  %v54_v3 = vld [vmem:[#allocation5 + $0x8] sm:$0xff]  ;;  %v55_v4 = vld [vmem:[#allocation5 + $0x10] sm:$0xff]  ;;  %v56_v6 = vld [vmem:[#allocation5 + $0x18] sm:$0xff]  ;;  %vm77_vm1 = vcmask 1043456   ;;  %vm73_vm2 = vcmask 818176   ;;  %s355_s2 = smov [#allocation8]  }
  0x39   :  { %v225_v5 = vpack.c.bf16 %v54_v3, %v53_v2  ;;  %v228_v7 = vpack.c.bf16 %v56_v6, %v55_v4  ;;  %v57_v8 = vld [vmem:[#allocation5 + $0x20] sm:$0xff]  ;;  %v58_v9 = vld [vmem:[#allocation5 + $0x28] sm:$0xff]  ;;  %v59_v11 = vld [vmem:[#allocation5 + $0x30] sm:$0xff]  ;;  %s168_s22 = sshll.u32 %s355_s2, 4  ;;  %vm160_vm3 = vcmask 80896   ;;  %s169_s22 = int_to_ptr.vmem [resolvable:$true] %s168_s22 }
  0x3a   :  { %v231_v10 = vpack.c.bf16 %v58_v9, %v57_v8  ;;  %v60_v12 = vld [vmem:[#allocation5 + $0x38] sm:$0xff]  ;;  %v61_v14 = vld [vmem:[#allocation5 + $0x40] sm:$0xff]  ;;  %v62_v15 = vld [vmem:[#allocation5 + $0x48] sm:$0xff]  ;;  %s319_s23 = scalar_lea.vmem %s169_s22, 128  ;;  %p324_p11 = scmp.lt.s32.totalorder %s169_s22, %s169_s22 }
  0x3b   :  { %226 = vmatpush3.bf16.msra.mxu0 %v225_v5  ;;  %v234_v13 = vpack.c.bf16 %v60_v12, %v59_v11  ;;  %v237_v16 = vpack.c.bf16 %v62_v15, %v61_v14  ;;  %v63_v17 = vld [vmem:[#allocation5 + $0x50] sm:$0xff]  ;;  %v64_v18 = vld [vmem:[#allocation5 + $0x58] sm:$0xff]  ;;  %v65_v20 = vld [vmem:[#allocation5 + $0x60] sm:$0xf]  ;;  %p320_p10 = scmp.ne.s32.totalorder %s169_s22, %s319_s23  ;;  %p325_p12 = scmp.lt.s32.totalorder %s319_s23, %s319_s23 }
  0x3c   :  { %227 = vmatprep.subr.bf16.mxu0 %v352_v0  ;;  %v240_v19 = vpack.c.bf16 %v64_v18, %v63_v17  ;;  %v52_v21 = vld [vmem:[#allocation2] sm:$0xff]  ;;  %v178_v22 = vld [vmem:[#allocation7] ss:$0 sm:$0xff] }
  0x3d   :  { %p326_p13 = por %p325_p12, %p324_p11 }
  0x3f   :  { %229 = vmatpush3.bf16.msra.mxu0 %v228_v7  ;;  %p327_p0 = pnand %p326_p13, %p320_p10 }
  0x40   :  { %230 = vmatprep.subr.bf16.mxu0 %v352_v0 }
  0x43   :  { %232 = vmatpush3.bf16.msra.mxu0 %v231_v10 }
  0x44   :  { %233 = vmatprep.subr.bf16.mxu0 %v352_v0 }
  0x47   :  { %235 = vmatpush3.bf16.msra.mxu0 %v234_v13 }
  0x48   :  { %236 = vmatprep.subr.bf16.mxu0 %v352_v0 }
  0x4b   :  { %238 = vmatpush3.bf16.msra.mxu0 %v237_v16 }
  0x4c   :  { %239 = vmatprep.subr.bf16.mxu0 %v352_v0 }
  0x4f   :  { %241 = vmatpush3.bf16.msra.mxu0 %v240_v19 }
  0x50   :  { %219 = vmatprep.subr.mxu0 %v354_v1 }
  0x53   :  { %220 = vmatpush3.msk.msra.mxu0 %vm77_vm1, %v65_v20 }
  0x54   :  { %222 = vmatmul.mubr.msk.f32.vlgmr.msra.gmra.mrb[0].mxu0 %vm73_vm2, %v52_v21 }
 0x127   :  { %v147_v23 = vpop.f32.mrb[0].mxu0 }
 0x128   :  { %v148_v24 = vadd.f32 %v178_v22, %v147_v23  ;;  %v223_v25 = vpop.f32.mrb[1].mxu0 }
 0x12a   :  { %v151_v26 = vmul.f32 %v148_v24, %v148_v24 }
 0x12c   :  { %v152_v27 = vmul.f32 0.044715, %v151_v26 }
 0x12e   :  { %v153_v28 = vadd.f32 1.0, %v152_v27 }
 0x130   :  { %v154_v29 = vmul.f32 %v153_v28, %v148_v24 }
 0x132   :  { %v155_v30 = vmul.f32 0.7978846, %v154_v29 }
 0x134   :  { %251 = vtanh.f32 %v155_v30 }
 0x13e   :  { %v252_v31 = vpop.eup %251 }
 0x13f   :  { %v157_v32 = vadd.f32 1.0, %v252_v31 }
 0x141   :  { %v158_v33 = vmul.f32 0.5, %v157_v32 }
 0x143   :  { %v159_v34 = vmul.f32 %v158_v33, %v148_v24 }
 0x145   :  { %161 = vst.msk [vmem:[#allocation8] sm:$0xff] %vm160_vm3, %v159_v34 }
 0x146   :  { %330 = shalt.err (!%p327_p0)
}
 0x147   :  { %s331_s26 = scalar_lea.hbm %s427_s3, 128 }
 0x148   :  { %p332_p1 = scmp.ne.s32.totalorder %s427_s3, %s331_s26  ;;  %p335_p2 = scmp.lt.u32.totalorder %s331_s26, %s427_s3 }
 0x14a   :  { %p337_p3 = pnand %p335_p2, %p332_p1 }
 0x14c   :  { %340 = shalt.err (!%p337_p3)
}
 0x14d   :  { %171 = dma.vmem_to_hbm [thread:$0]  %s169_s22, 128, %s427_s3, [#allocation4]  }
 0x14e   :  { %345 = dma.done.wait [#allocation4], 128  }
 0x14f   :  { %346 = vsyncadd [#allocation4], 4294967168 }
 0x150   :  { %175 = vsyncpa [#allocation3], 1 }
 0x151   :  { %176 = vsyncpa [#allocation6], 1 }
 0x152   :  { %177 = vsyncpa [#allocation4], 1 }

</bundles_post_ra>
